<compile_context>
chip_gen: v6e
topology: v6e:2x2x1
jax: 0.10.0
libtpu: 0.0.40
codegen_flags: <defaults>
</compile_context>

<pallas_src>
import functools

import jax
import jax.numpy as jnp
from jax.experimental import pallas as pl
from jax.experimental.pallas import tpu as pltpu


def _round_up(n: int, m: int) -> int:
    return ((n + m - 1) // m) * m


# ---------------------------------------------------------------------------
# Kernel bodies
# ---------------------------------------------------------------------------
def _q_values(x_ref, w1_ref, b1_ref, w2_ref, b2_ref):
    """Padded f32 Q-values [TB, A_pad]; padded columns carry -1e30 bias."""
    # bf16 cast in-kernel (VPU, free) -> MXU matmuls with f32 accumulation.
    xb = x_ref[...].astype(jnp.bfloat16)
    h = jnp.dot(xb, w1_ref[...], preferred_element_type=jnp.float32)
    h = jnp.maximum(h + b1_ref[...], 0.0)
    q = jnp.dot(h.astype(jnp.bfloat16), w2_ref[...],
                preferred_element_type=jnp.float32) + b2_ref[...]
    return q


def _greedy(q):
    """Fused argmax over the (padded) action axis; first-max tie-break."""
    row_max = jnp.max(q, axis=-1, keepdims=True)
    col_ids = jax.lax.broadcasted_iota(jnp.int32, q.shape, 1)
    ids = jnp.where(q == row_max, col_ids, jnp.int32(q.shape[-1]))
    return jnp.min(ids, axis=-1, keepdims=True)


def _qnet_kernel(x_ref, w1_ref, b1_ref, w2_ref, b2_ref, q_ref, a_ref, *,
                 dim_action):
    q = _q_values(x_ref, w1_ref, b1_ref, w2_ref, b2_ref)
    q_ref[...] = q[:, :dim_action].astype(q_ref.dtype)   # unpadded writeback
    a_ref[...] = _greedy(q)


def _action_kernel(x_ref, w1_ref, b1_ref, w2_ref, b2_ref, a_ref):
    q = _q_values(x_ref, w1_ref, b1_ref, w2_ref, b2_ref)
    a_ref[...] = _greedy(q)


# ---------------------------------------------------------------------------
# Parameter preparation (pad / cast ONCE, not per call)
# ---------------------------------------------------------------------------
def prepare_params(w1, b1, w2, b2):
    """Pad W2/b2 action dim to 128 lanes and cast weights to bf16, once."""
    dim_action = w2.shape[1]
    a_pad = _round_up(dim_action, 128)
    if a_pad != dim_action:
        w2 = jnp.pad(w2, ((0, 0), (0, a_pad - dim_action)))
        b2 = jnp.pad(b2.reshape(1, -1), ((0, 0), (0, a_pad - dim_action)),
                     constant_values=-1e30)   # padded cols never win argmax
    return {
        "w1": w1.astype(jnp.bfloat16),
        "b1": b1.reshape(1, -1).astype(jnp.float32),
        "w2": w2.astype(jnp.bfloat16),
        "b2": b2.reshape(1, -1).astype(jnp.float32),
        "dim_action": dim_action,
    }


# ---------------------------------------------------------------------------
# Host-side wrappers
# ---------------------------------------------------------------------------
def _batch_tiling(batch, max_batch_tile):
    # >= 2 grid steps whenever possible (v7x megacore), sublane aligned.
    tb = _round_up(pl.cdiv(batch, 2), 8)
    tb = max(8, min(tb, max_batch_tile))
    grid_b = pl.cdiv(batch, tb)
    return tb, grid_b


def _in_specs(tb, dim_state, dim_hidden, a_pad):
    return [
        pl.BlockSpec((tb, dim_state), lambda i: (i, 0)),          # x (blocked)
        pl.BlockSpec((dim_state, dim_hidden), lambda i: (0, 0)),  # w1 resident
        pl.BlockSpec((1, dim_hidden), lambda i: (0, 0)),          # b1 resident
        pl.BlockSpec((dim_hidden, a_pad), lambda i: (0, 0)),      # w2 resident
        pl.BlockSpec((1, a_pad), lambda i: (0, 0)),               # b2 resident
    ]


def _cost(batch, dim_state, dim_hidden, a_pad, dim_action, *, with_q):
    flops = 2 * batch * (dim_state * dim_hidden + dim_hidden * a_pad)
    bytes_accessed = (
        batch * dim_state * 4                        # x (f32 read)
        + dim_state * dim_hidden * 2 + dim_hidden * 4  # w1, b1
        + dim_hidden * a_pad * 2 + a_pad * 4           # w2, b2
        + batch * 4                                    # actions out
        + (batch * dim_action * 4 if with_q else 0)    # q out (unpadded)
    )
    return pl.CostEstimate(flops=flops, transcendentals=0,
                           bytes_accessed=bytes_accessed)


def qnet_apply(x, params, *, max_batch_tile=8192):
    """Returns (q_values [batch, dim_action] f32, greedy_actions [batch] i32)."""
    batch, dim_state = x.shape
    w1, b1, w2, b2 = params["w1"], params["b1"], params["w2"], params["b2"]
    dim_action = params["dim_action"]
    dim_hidden = w1.shape[1]
    a_pad = w2.shape[1]
    x = x.astype(jnp.float32)                 # bf16 cast happens in-kernel
    tb, grid_b = _batch_tiling(batch, max_batch_tile)

    q, actions = pl.pallas_call(
        functools.partial(_qnet_kernel, dim_action=dim_action),
        out_shape=(
            jax.ShapeDtypeStruct((batch, dim_action), jnp.float32),
            jax.ShapeDtypeStruct((batch, 1), jnp.int32),
        ),
        grid_spec=pltpu.PrefetchScalarGridSpec(
            num_scalar_prefetch=0,
            grid=(grid_b,),
            in_specs=_in_specs(tb, dim_state, dim_hidden, a_pad),
            out_specs=[
                pl.BlockSpec((tb, dim_action), lambda i: (i, 0)),  # unpadded q
                pl.BlockSpec((tb, 1), lambda i: (i, 0)),           # actions
            ],
        ),
        compiler_params=pltpu.CompilerParams(
            dimension_semantics=("parallel",)),   # megacore sharding on v7x
        cost_estimate=_cost(batch, dim_state, dim_hidden, a_pad, dim_action,
                            with_q=True),
    )(x, w1, b1, w2, b2)
    return q, actions[:, 0]


def get_action(x, params, *, max_batch_tile=8192):
    """Greedy actions only — never writes Q-values to HBM."""
    batch, dim_state = x.shape
    w1, b1, w2, b2 = params["w1"], params["b1"], params["w2"], params["b2"]
    dim_action = params["dim_action"]
    dim_hidden = w1.shape[1]
    a_pad = w2.shape[1]
    x = x.astype(jnp.float32)
    tb, grid_b = _batch_tiling(batch, max_batch_tile)

    actions = pl.pallas_call(
        _action_kernel,
        out_shape=jax.ShapeDtypeStruct((batch, 1), jnp.int32),
        grid_spec=pltpu.PrefetchScalarGridSpec(
            num_scalar_prefetch=0,
            grid=(grid_b,),
            in_specs=_in_specs(tb, dim_state, dim_hidden, a_pad),
            out_specs=pl.BlockSpec((tb, 1), lambda i: (i, 0)),
        ),
        compiler_params=pltpu.CompilerParams(
            dimension_semantics=("parallel",)),
        cost_estimate=_cost(batch, dim_state, dim_hidden, a_pad, dim_action,
                            with_q=False),
    )(x, w1, b1, w2, b2)
    return actions[:, 0]


def qnet_forward(x, params, **kw):
    q, _ = qnet_apply(x, params, **kw)
    return q


def init_params(key, dim_state, dim_action, dim_hidden=64):
    """Deterministic synthetic parameters (PyTorch-Linear-like uniform init)."""
    k1, k2, k3, k4 = jax.random.split(key, 4)
    lim1 = 1.0 / jnp.sqrt(jnp.float32(dim_state))
    lim2 = 1.0 / jnp.sqrt(jnp.float32(dim_hidden))
    w1 = jax.random.uniform(k1, (dim_state, dim_hidden), jnp.float32, -lim1, lim1)
    b1 = jax.random.uniform(k2, (1, dim_hidden), jnp.float32, -lim1, lim1)
    w2 = jax.random.uniform(k3, (dim_hidden, dim_action), jnp.float32, -lim2, lim2)
    b2 = jax.random.uniform(k4, (1, dim_action), jnp.float32, -lim2, lim2)
    return w1, b1, w2, b2


if __name__ == "__main__":
    dim_state, dim_action, dim_hidden = 16, 4, 64
    batch = 10  # deliberately not a multiple of 8 -> ragged last grid block

    key = jax.random.PRNGKey(0)
    k_x, k_p = jax.random.split(key)
    x = jax.random.normal(k_x, (batch, dim_state), jnp.float32)
    w1, b1, w2, b2 = init_params(k_p, dim_state, dim_action, dim_hidden)
    params = prepare_params(w1, b1, w2, b2)

    q, actions = qnet_apply(x, params)
    q = jax.block_until_ready(q)
    actions = jax.block_until_ready(actions)
    actions_only = jax.block_until_ready(get_action(x, params))

    # Independent plain-JAX reference mirroring the kernel's bf16/f32 math.
    x_b = x.astype(jnp.bfloat16)
    w1_b = w1.astype(jnp.bfloat16)
    w2_b = w2.astype(jnp.bfloat16)
    h_ref = jnp.maximum(
        jnp.dot(x_b, w1_b, preferred_element_type=jnp.float32) + b1, 0.0)
    q_ref = jnp.dot(h_ref.astype(jnp.bfloat16), w2_b,
                    preferred_element_type=jnp.float32) + b2
    a_ref = jnp.argmax(q_ref, axis=-1).astype(jnp.int32)

    assert q.shape == (batch, dim_action)
    assert actions.shape == (batch,)
    assert jnp.allclose(q, q_ref, atol=2e-3, rtol=2e-3), \
        f"max abs err {jnp.max(jnp.abs(q - q_ref))}"
    assert jnp.array_equal(actions, a_ref), (actions, a_ref)
    assert jnp.array_equal(actions_only, a_ref), (actions_only, a_ref)

    print("KERNEL_OK")
</pallas_src>

<mosaic_0001>
module attributes {stable_mosaic.version = 11 : i64} {
  func.func @_qnet_kernel(%arg0: i32, %arg1: memref<8x16xf32, #tpu.memory_space<vmem>>, %arg2: memref<16x64xbf16, #tpu.memory_space<vmem>>, %arg3: memref<1x64xf32, #tpu.memory_space<vmem>>, %arg4: memref<64x128xbf16, #tpu.memory_space<vmem>>, %arg5: memref<1x128xf32, #tpu.memory_space<vmem>>, %arg6: memref<8x4xf32, #tpu.memory_space<vmem>>, %arg7: memref<8x1xi32, #tpu.memory_space<vmem>>) attributes {dimension_semantics = [#tpu.dimension_semantics<parallel>], iteration_bounds = array<i64: 2>, scalar_prefetch = 0 : i64, scratch_operands = 0 : i64, tpu.core_type = #tpu.core_type<tc>, window_params = [{transform_indices = @transform_0, window_bounds = array<i64: 8, 16>}, {pipeline_mode = #tpu.pipeline_mode<synchronous>, transform_indices = @transform_1, window_bounds = array<i64: 16, 64>}, {pipeline_mode = #tpu.pipeline_mode<synchronous>, transform_indices = @transform_2, window_bounds = array<i64: 1, 64>}, {pipeline_mode = #tpu.pipeline_mode<synchronous>, transform_indices = @transform_3, window_bounds = array<i64: 64, 128>}, {pipeline_mode = #tpu.pipeline_mode<synchronous>, transform_indices = @transform_4, window_bounds = array<i64: 1, 128>}, {transform_indices = @transform_5, window_bounds = array<i64: 8, 4>}, {transform_indices = @transform_6, window_bounds = array<i64: 8, 1>}]} {
    %c0 = arith.constant 0 : index
    %c0_0 = arith.constant 0 : index
    %0 = vector.load %arg1[%c0, %c0_0] : memref<8x16xf32, #tpu.memory_space<vmem>>, vector<8x16xf32>
    %1 = arith.truncf %0 : vector<8x16xf32> to vector<8x16xbf16>
    %c0_1 = arith.constant 0 : index
    %c0_2 = arith.constant 0 : index
    %2 = vector.load %arg2[%c0_1, %c0_2] : memref<16x64xbf16, #tpu.memory_space<vmem>>, vector<16x64xbf16>
    %cst = arith.constant dense<0.000000e+00> : vector<8x64xf32>
    %3 = tpu.matmul %1, %2, %cst {dimension_numbers = #tpu.dot_dimension_numbers<[1], [0], [0], [1], [0, 0, 1, 1], [], []>} : vector<8x16xbf16>, vector<16x64xbf16>, vector<8x64xf32> -> vector<8x64xf32>
    %c0_3 = arith.constant 0 : index
    %c0_4 = arith.constant 0 : index
    %4 = vector.load %arg3[%c0_3, %c0_4] : memref<1x64xf32, #tpu.memory_space<vmem>>, vector<1x64xf32>
    %5 = vector.broadcast %4 : vector<1x64xf32> to vector<8x64xf32>
    %6 = arith.addf %3, %5 : vector<8x64xf32>
    %cst_5 = arith.constant 0.000000e+00 : f32
    %7 = vector.broadcast %cst_5 : f32 to vector<8x64xf32>
    %8 = arith.maximumf %6, %7 : vector<8x64xf32>
    %9 = arith.truncf %8 : vector<8x64xf32> to vector<8x64xbf16>
    %c0_6 = arith.constant 0 : index
    %c0_7 = arith.constant 0 : index
    %10 = vector.load %arg4[%c0_6, %c0_7] : memref<64x128xbf16, #tpu.memory_space<vmem>>, vector<64x128xbf16>
    %cst_8 = arith.constant dense<0.000000e+00> : vector<8x128xf32>
    %11 = tpu.matmul %9, %10, %cst_8 {dimension_numbers = #tpu.dot_dimension_numbers<[1], [0], [0], [1], [0, 0, 1, 1], [], []>} : vector<8x64xbf16>, vector<64x128xbf16>, vector<8x128xf32> -> vector<8x128xf32>
    %c0_9 = arith.constant 0 : index
    %c0_10 = arith.constant 0 : index
    %12 = vector.load %arg5[%c0_9, %c0_10] : memref<1x128xf32, #tpu.memory_space<vmem>>, vector<1x128xf32>
    %13 = vector.broadcast %12 : vector<1x128xf32> to vector<8x128xf32>
    %14 = arith.addf %11, %13 : vector<8x128xf32>
    %15 = vector.extract_strided_slice %14 {offsets = [0, 0], sizes = [8, 4], strides = [1, 1]} : vector<8x128xf32> to vector<8x4xf32>
    %c0_11 = arith.constant 0 : index
    %c0_12 = arith.constant 0 : index
    %16 = vector.load %arg6[%c0_11, %c0_12] : memref<8x4xf32, #tpu.memory_space<vmem>>, vector<8x4xf32>
    tpu.vector_store %arg6[%c0_11, %c0_12], %15 {strides = array<i32>} : memref<8x4xf32, #tpu.memory_space<vmem>>, vector<8x4xf32>,
    %cst_13 = arith.constant dense<0xFF800000> : vector<8xf32>
    %17 = vector.multi_reduction <maximumf>, %14, %cst_13 [1] : vector<8x128xf32> to vector<8xf32>
    %18 = vector.shape_cast %17 : vector<8xf32> to vector<8x1xf32>
    %19 = tpu.iota {dimensions = array<i32: 1>} : vector<8x128xi32>
    %20 = vector.broadcast %18 : vector<8x1xf32> to vector<8x128xf32>
    %21 = arith.cmpf oeq, %14, %20 : vector<8x128xf32>
    %c128_i32 = arith.constant 128 : i32
    %22 = vector.broadcast %c128_i32 : i32 to vector<8x128xi32>
    %23 = arith.select %21, %19, %22 : vector<8x128xi1>, vector<8x128xi32>
    %cst_14 = arith.constant dense<2147483647> : vector<8xi32>
    %24 = vector.multi_reduction <minsi>, %23, %cst_14 [1] : vector<8x128xi32> to vector<8xi32>
    %25 = vector.shape_cast %24 : vector<8xi32> to vector<8x1xi32>
    %c0_15 = arith.constant 0 : index
    %c0_16 = arith.constant 0 : index
    %26 = vector.load %arg7[%c0_15, %c0_16] : memref<8x1xi32, #tpu.memory_space<vmem>>, vector<8x1xi32>
    tpu.vector_store %arg7[%c0_15, %c0_16], %25 {strides = array<i32>} : memref<8x1xi32, #tpu.memory_space<vmem>>, vector<8x1xi32>,
    return
  }
  func.func @transform_0(%arg0: i32) -> (i32, i32) {
    %c0_i32 = arith.constant 0 : i32
    %c0_i32_0 = arith.constant 0 : i32
    return %arg0, %c0_i32 : i32, i32
  }
  func.func @transform_1(%arg0: i32) -> (i32, i32) {
    %c0_i32 = arith.constant 0 : i32
    %c0_i32_0 = arith.constant 0 : i32
    %c0_i32_1 = arith.constant 0 : i32
    return %c0_i32, %c0_i32_0 : i32, i32
  }
  func.func @transform_2(%arg0: i32) -> (i32, i32) {
    %c0_i32 = arith.constant 0 : i32
    %c0_i32_0 = arith.constant 0 : i32
    %c0_i32_1 = arith.constant 0 : i32
    return %c0_i32, %c0_i32_0 : i32, i32
  }
  func.func @transform_3(%arg0: i32) -> (i32, i32) {
    %c0_i32 = arith.constant 0 : i32
    %c0_i32_0 = arith.constant 0 : i32
    %c0_i32_1 = arith.constant 0 : i32
    return %c0_i32, %c0_i32_0 : i32, i32
  }
  func.func @transform_4(%arg0: i32) -> (i32, i32) {
    %c0_i32 = arith.constant 0 : i32
    %c0_i32_0 = arith.constant 0 : i32
    %c0_i32_1 = arith.constant 0 : i32
    return %c0_i32, %c0_i32_0 : i32, i32
  }
  func.func @transform_5(%arg0: i32) -> (i32, i32) {
    %c0_i32 = arith.constant 0 : i32
    %c0_i32_0 = arith.constant 0 : i32
    return %arg0, %c0_i32 : i32, i32
  }
  func.func @transform_6(%arg0: i32) -> (i32, i32) {
    %c0_i32 = arith.constant 0 : i32
    %c0_i32_0 = arith.constant 0 : i32
    return %arg0, %c0_i32 : i32, i32
  }
}

</mosaic_0001>

<bundles_post_ra>
// kernel: tpu_custom_call.1
= control target key start
LH: loop header
LB: loop body
LE: loop exit
PB: predicated region body
PF: predicated region fallthrough
CT: control target
= control target key end

     0   :  { %12 = vsyncpa [#allocation3], 0  ;;  %s1017_s0 = inlined_call_operand.hbm [shape: f32[10,16], index: 0, kind: input, shape index: {}]   ;;  %s1018_s1 = inlined_call_operand.hbm [shape: bf16[16,64], index: 1, kind: input, shape index: {}]   ;;  %s1019_s2 = inlined_call_operand.vmem [shape: f32[1,64], index: 2, kind: input, shape index: {}]   ;;  %s1020_s3 = inlined_call_operand.hbm [shape: bf16[64,128], index: 3, kind: input, shape index: {}]   ;;  %s1021_s4 = inlined_call_operand.vmem [shape: f32[1,128], index: 4, kind: input, shape index: {}]   ;;  %s1022_s5 = inlined_call_operand.vmem [shape: f32[10,4], index: 5, kind: output, shape index: {0}]   ;;  %s1023_s6 = inlined_call_operand.vmem [shape: s32[10,1], index: 6, kind: output, shape index: {1}]  }
   0x1   :  { %14 = vsyncpa [#allocation3 + $0x1], 0 }
   0x2   :  { %15 = vsyncpa [#allocation5], 0  ;;  %s873_s21 = smov 0   ;;  %s875_s22 = smov 0  }
   0x3   :  { %s877_s23 = smov 0   ;;  %s879_s24 = smov 0  }
   0x4 LB: > { %s892_s25 = sadd.s32 4294967295, %s829_s24   ;;  %p41_p0 = scmp.ne.s32.totalorder %s821_s22, %s817_s21  ;;  %s829_s24 = sphi %s879_s24, %s1039_s24   ;;  %s825_s23 = sphi %s877_s23, %s1038_s23   ;;  %s821_s22 = sphi %s875_s22, %s1037_s22   ;;  %s817_s21 = sphi %s873_s21, %s1036_s21  }
   0x5   : > { %p1024_p1 = scmp.eq.s32.totalorder %s892_s25, 0  ;;  %p594_p2 = scmp.ge.s32.totalorder %s829_s24, 1 }
   0x6   : > { %p188_p3 = scmp.lt.s32.totalorder %s829_s24, 3  ;;  %s831_s28 = smov [#allocation4]  }
   0x7   : > { %p900_p4 = por %p1024_p1, %p41_p0  ;;  %s200_s29 = sshll.u32 %s831_s28, 4  ;;  %s201_s29 = int_to_ptr.vmem [resolvable:$true] %s200_s29 }
   0x8   : > { %p904_p5 = pnand %p594_p2, %p188_p3  ;;  %s832_s7 = smov [#allocation6]  }
   0x9   : > { %s1027_s26 = scalar_select %p900_p4, 1, 0 }
   0xa   : > { %s1028_s27 = scalar_select %p904_p5, 1, 0 }
   0xb   : > { %p652_p6 = pneg %p904_p5  ;;  %s216_s8 = sshll.u32 %s832_s7, 4  ;;  %s217_s8 = int_to_ptr.vmem [resolvable:$true] %s216_s8 }
   0xc   : > { %s722_s9 = scalar_lea.vmem %s201_s29, 128  ;;  %p730_p12 = scmp.lt.s32.totalorder %s201_s29, %s201_s29 }
   0xd   : > { %p912_p7 = pnand %p652_p6, %p1024_p1  ;;  %p723_p9 = scmp.ne.s32.totalorder %s201_s29, %s722_s9 }
   0xe   : > { %p731_p13 = scmp.lt.s32.totalorder %s722_s9, %s722_s9 }
   0xf   : > { %p713_p8 = pneg %p912_p7 }
  0x10   : > { %p732_p0 = por %p731_p13, %p730_p12 }
  0x11   : > { %p725_p10 = pnand %p723_p9, %p713_p8 }
  0x13   : > { %p726_p11 = pneg %p725_p10 }
  0x15   : > { %p733_p2 = pnand %p732_p0, %p726_p11 }
  0x17   : > { %736 = shalt.err (!%p733_p2)
}
  0x18   : > { %s833_s10 = smov 64   ;;  %s834_s11 = smov 4  }
  0x19   : > { %655 = dma.hbm_to_vmem [thread:$0]  (!%p912_p7), %s1018_s1, 128, %s201_s29, [#allocation5], %s833_s10, %s833_s10, %s834_s11  }
  0x1a   : > { %s748_s14 = scalar_lea.vmem %s217_s8, 512  ;;  %p756_p10 = scmp.lt.s32.totalorder %s217_s8, %s217_s8 }
  0x1b   : > { %p749_p3 = scmp.ne.s32.totalorder %s217_s8, %s748_s14  ;;  %p757_p1 = scmp.lt.s32.totalorder %s748_s14, %s748_s14 }
  0x1d   : > { %p751_p6 = pnand %p749_p3, %p713_p8  ;;  %p758_p12 = por %p757_p1, %p756_p10 }
  0x1f   : > { %p752_p9 = pneg %p751_p6 }
  0x21   : > { %p759_p11 = pnand %p758_p12, %p752_p9 }
  0x23   : > { %762 = shalt.err (!%p759_p11)
}
  0x24   : > { %658 = dma.hbm_to_vmem [thread:$0]  (!%p912_p7), %s1020_s3, 512, %s217_s8, [#allocation5], %s833_s10, %s833_s10, %s834_s11  }
  0x25   : > { %s935_s17 = sadd.s32 1, %s829_s24   ;;  %s28_s18 = sadd.s32 1, %s825_s23 }
  0x26   : > { %s25_s19 = ssub.s32 %s829_s24, %s935_s17  ;;  %p35_p1 = scmp.ne.s32.totalorder %s825_s23, %s821_s22 }
  0x27   : > { %p26_p8 = scmp.eq.s32.totalorder %s25_s19, 0  ;;  %p36_p13 = scmp.eq.s32.totalorder %s829_s24, 0 }
  0x28   : > { %p665_p0 = scmp.lt.s32.totalorder %s829_s24, 2  ;;  %s233_s20 = sand.u32 1, %s825_s23  }
  0x29   : > { %s946_s21 = scalar_select %p26_p8, %s825_s23, %s28_s18  }
  0x2a   : > { %p37_p2 = por %p36_p13, %p35_p1  ;;  %s598_s28 = sshll.u32 %s233_s20, 3 }
  0x2b   : > { %s599_s29 = sshll.u32 %s829_s24, 7  ;;  %s237_s8 = scalar_lea.vmem [#allocation2], %s598_s28 }
  0x2c   : > { %s952_s9 = scalar_lea.hbm %s1017_s0, %s599_s29  ;;  %s244_s10 = sshll.u32 %s237_s8, 4  ;;  %s245_s10 = int_to_ptr.vmem [resolvable:$true] %s244_s10 }
  0x2d   : > { %p954_p7 = pnand %p665_p0, %p37_p2  ;;  %s234_s12 = scalar_lea.sflag [#allocation3], %s233_s20 }
  0x2e   : > { %s763_s13 = scalar_lea.hbm %s952_s9, 128  ;;  %s768_s15 = scalar_lea.hbm %s1017_s0, 256 }
  0x2f   : > { %p764_p3 = scmp.ne.s32.totalorder %s952_s9, %s763_s13  ;;  %p765_p6 = pneg %p954_p7 }
  0x30   : > { %p769_p12 = scmp.lt.s32.totalorder %s952_s9, %s1017_s0  ;;  %p770_p11 = scmp.lt.s32.totalorder %s768_s15, %s763_s13 }
  0x31   : > { %p766_p9 = pnand %p765_p6, %p764_p3 }
  0x32   : > { %p771_p1 = por %p770_p11, %p769_p12 }
  0x33   : > { %p767_p10 = pneg %p766_p9 }
  0x35   : > { %p772_p8 = pnand %p771_p1, %p767_p10 }
  0x37   : > { %775 = shalt.err (!%p772_p8)
}
  0x38   : > { %s776_s19 = scalar_lea.vmem %s245_s10, 128  ;;  %s835_s20 = smov [#allocation2]  }
  0x39   : > { %p777_p13 = scmp.ne.s32.totalorder %s245_s10, %s776_s19  ;;  %s781_s28 = sshll.u32 %s835_s20, 4  ;;  %s782_s28 = int_to_ptr.vmem [resolvable:$false] %s781_s28 }
  0x3a   : > { %s783_s29 = scalar_lea.vmem %s782_s28, 256  ;;  %p784_p3 = scmp.lt.s32.totalorder %s245_s10, %s782_s28 }
  0x3b   : > { %p779_p0 = pnand %p777_p13, %p765_p6  ;;  %p785_p9 = scmp.lt.s32.totalorder %s783_s29, %s776_s19 }
  0x3d   : > { %p780_p2 = pneg %p779_p0  ;;  %p786_p4 = por %p785_p9, %p784_p3 }
  0x3f   : > { %p787_p5 = pnand %p786_p4, %p780_p2 }
  0x41   : > { %790 = shalt.err (!%p787_p5)
}
  0x42   : > { %662 = dma.hbm_to_vmem [thread:$0]  (!%p954_p7), %s952_s9, 128, %s245_s10, %s234_s12  }
  0x43   : > { %p1031_p10 = scmp.ne.s32.totalorder %s1028_s27, 0 }
  0x44   : > { %s255_s30 = sand.u32 (!%p1031_p10), 1, %s821_s22   ;;  %p1032_p6 = scmp.ne.s32.totalorder (!%p1031_p10), %s1027_s26, 0 }
  0x45   : > { %253 = sbr.rel (%p1031_p10) target bundleno = 905 (0x389), region = 40  ;;  %s601_s7 = sshll.u32 (!%p1031_p10), %s255_s30, 3 }
  0x46   : > { %s256_s8 = scalar_lea.sflag (!%p1031_p10), [#allocation3], %s255_s30  ;;  %s259_s13 = scalar_lea.vmem (!%p1031_p10), [#allocation2], %s601_s7 }
  0x4a   : > { %808 = dma.done.wait (%p1032_p6), %s256_s8, 128  }
  0x4b   : > { %810 = vsyncadd (%p1032_p6), %s256_s8, 4294967168  ;;  %p1033_p4 = scmp.eq.s32.totalorder %s892_s25, 0 }
  0x4d   : > { %812 = dma.done.wait (%p1033_p4), [#allocation5], 640   ;;  %p1034_p5 = pmov %p1033_p4 }
  0x4e   : > { %v836_v0 = vmov 0.0   ;;  %vm837_vm0 = vmmov 0   ;;  %v706_v1 = vld [vmem:[#allocation4] sm:$0xff]   ;;  %v308_v2 = vld [vmem:[%s259_s13] sm:$0xff]  ;;  %vm325_vm1 = vcmask 130048   ;;  %v710_v7 = vld [vmem:[#allocation6] sm:$0xff]   ;;  %v458_v22 = vlaneseq }
  0x4f   : > { %814 = vsyncadd (%p1034_p5), [#allocation5], 4294966656  ;;  %624 = vmatprep.subr.bf16.mxu0 %v836_v0  ;;  %626 = vmatprep.mubr.msk.bf16.mxu0 %vm837_vm0, %v836_v0  ;;  %v309_v3 = vpack.c.bf16 %v308_v2, %v308_v2  ;;  %v707_v4 = vld [vmem:[#allocation6 + $0x18] sm:$0xff]   ;;  %v708_v5 = vld [vmem:[#allocation6 + $0x10] sm:$0xff]   ;;  %vm410_vm2 = vcmask 523264   ;;  %p299_p7 = scmp.lt.s32.totalorder %s892_s25, 1 }
  0x50   : > { %630 = vmatprep.subr.bf16.mxu1 %v836_v0  ;;  %638 = vmatprep.mubr.msk.bf16.mxu1 %vm837_vm0, %v836_v0  ;;  %v709_v6 = vld [vmem:[#allocation6 + $0x8] sm:$0xff]   ;;  %vm454_vm3 = vcmask 31744   ;;  %v459_v23 = vand.u32 127, %v458_v22  ;;  %vm476_vm6 = vcmask 7168  }
  0x51   : > { %625 = vmatpush3.bf16.msra.mxu0 %v706_v1  ;;  %631 = vmatpush3.bf16.msra.mxu1 %v707_v4  ;;  %v606_v8 = vld [vmem:[%s1019_s2] ss:$0 sm:$0xff]  ;;  %s1041_s25 = smov (!%p299_p7, %s892_s25), 1 }
  0x52   : > { %632 = vmatprep.subr.bf16.mxu1 %v836_v0  ;;  %s604_s9 = sshll.u32 %s1041_s25, 3  ;;  %v609_v16 = vld [vmem:[%s1021_s4] ss:$0 sm:$0xff] }
  0x53   : > { %s302_s14 = scalar_lea.vmem %s1022_s5, %s604_s9  ;;  %s306_s18 = scalar_lea.vmem %s1023_s6, %s604_s9 }
  0x54   : > { %627 = vmatmul.mubr.msk.bf16.vlgmr.msra.gmra.mxu0 %vm325_vm1, %v309_v3 }
  0x55   : > { %633 = vmatpush3.bf16.msra.mxu1 %v708_v5 }
  0x56   : > { %634 = vmatprep.subr.bf16.mxu1 %v836_v0 }
  0x59   : > { %635 = vmatpush3.bf16.msra.mxu1 %v709_v6 }
  0x5a   : > { %636 = vmatprep.subr.bf16.mxu1 %v836_v0 }
  0x5d   : > { %637 = vmatpush3.bf16.msra.mxu1 %v710_v7 }
 0x114   : > { %v363_v9 = vpop.f32.mrf.mxu0 }
 0x115   : > { %v364_v10 = vadd.f32 %v606_v8, %v363_v9 }
 0x116   : > { %v628_v11 = vpop.f32.mrf.mxu0 }
 0x117   : > { %v369_v12 = vmax.f32 %v364_v10, 0.0 }
 0x118   : > { %v366_v13 = vpop.f32.mrf.mxu0 }
 0x119   : > { %v370_v14 = vpack.c.bf16 %v369_v12, %v369_v12 }
 0x11a   : > { %v629_v15 = vpop.f32.mrf.mxu0 }
 0x11b   : > { %639 = vmatmul.mubr.msk.bf16.vlgmr.msra.gmra.mxu1 %vm410_vm2, %v370_v14 }
 0x1db   : > { %v448_v17 = vpop.f32.mrf.mxu1 }
 0x1dc   : > { %v449_v18 = vadd.f32 %v609_v16, %v448_v17 }
 0x1dd   : > { %v640_v19 = vpop.f32.mrf.mxu1 }
 0x1de   : > { %455 = vst.msk [vmem:[%s302_s14] sm:$0xff] %vm454_vm3, %v449_v18  ;;  %456 = vmax.xlane.f32.xlu0 %v449_v18 }
 0x1df   : > { %v451_v20 = vpop.f32.mrf.mxu1 }
 0x1e1   : > { %v641_v21 = vpop.f32.mrf.mxu1 }
 0x267   : > { %v457_v24 = vpop.xlane.xlu0 %456 }
 0x268   : > { %vm460_vm4 = vcmp.eq.f32.partialorder %v449_v18, %v457_v24 }
 0x269   : > { %v461_v25 = vsel %vm460_vm4, %v459_v23, 128 }
 0x26a   : > { %v463_v26 = vshra.s32 %v461_v25, 16  ;;  %v462_v28 = vand.u32 65535, %v461_v25 }
 0x26c   : > { %v465_v27 = vcvt.s32.f32 %v463_v26  ;;  %v464_v30 = vcvt.s32.f32 %v462_v28 }
 0x26e   : > { %466 = vmin.xlane.f32.xlu0 %v465_v27 }
 0x2f7   : > { %v467_v29 = vpop.xlane.xlu0 %466 }
 0x2f8   : > { %vm468_vm5 = vcmp.eq.f32.partialorder %v465_v27, %v467_v29  ;;  %v473_v32 = vcvt.f32.s32 %v467_v29 }
 0x2f9   : > { %v469_v31 = vsel %vm468_vm5, %v464_v30, inf }
 0x2fa   : > { %470 = vmin.xlane.f32.xlu1 %v469_v31  ;;  %v474_v34 = vshll.u32 %v473_v32, 16 }
 0x383   : > { %v471_v33 = vpop.xlane.xlu1 %470 }
 0x384   : > { %v472_v35 = vcvt.f32.s32 %v471_v33 }
 0x386   : > { %v475_v36 = vadd.s32 %v474_v34, %v472_v35 }
 0x388   : > { %477 = vst.msk [vmem:[%s306_s18] sm:$0xff] %vm476_vm6, %v475_v36 }
 0x389 PF: > { %s1035_s19 = smov %s946_s21  ;;  %p18_p12 = scmp.ge.s32.totalorder %s935_s17, 4  }
 0x38a   : > { %s1036_s21 = smov %s821_s22  ;;  %s1037_s22 = smov %s825_s23 }
 0x38b   : > { %s1038_s23 = smov %s1035_s19  ;;  %s1039_s24 = smov %s935_s17 }
 0x38c   :  { %20 = sbr.rel (!%p18_p12) target bundleno = 4 (0x4), region = 100 }
 0x391   :  { %511 = vsyncpa [#allocation3], 1 }
 0x392   :  { %513 = vsyncpa [#allocation3 + $0x1], 1 }
 0x393   :  { %514 = vsyncpa [#allocation5], 1 }

</bundles_post_ra>
